<compile_context>
chip_gen: v6e
topology: v6e:2x2x1
jax: 0.10.0
libtpu: 0.0.40
codegen_flags: <defaults>
</compile_context>

<pallas_src>
import jax
import jax.numpy as jnp
from jax.experimental import pallas as pl
from jax.experimental.pallas import tpu as pltpu


def _round_up(v: int, m: int) -> int:
    return ((v + m - 1) // m) * m


def mlp_kernel(x_ref, w1_ref, b1_ref, w2_ref, b2_ref, w3_ref, b3_ref,
               o_ref, h1_acc):
    """Fused 3-layer MLP.  Grid = (batch tiles, K tiles over input_size).

    The K axis (reduction of the first matmul) is last and 'arbitrary'; the
    layer-1 accumulator lives in VMEM scratch and the rest of the network
    (bias+ReLU, layers 2 and 3, output store) runs once per batch tile on the
    final K step.
    """
    k = pl.program_id(1)

    @pl.when(k == 0)
    def _():
        h1_acc[...] = jnp.zeros_like(h1_acc)

    # Layer-1 partial product on the MXU: bf16 operands, f32 accumulation.
    h1_acc[...] += jnp.dot(x_ref[...], w1_ref[...],
                           preferred_element_type=jnp.float32)

    @pl.when(k == pl.num_programs(1) - 1)
    def _():
        # Epilogue (bias + ReLU) stays in f32 on the VPU.
        h1 = jnp.maximum(h1_acc[...] + b1_ref[...], 0.0)
        h2 = jnp.dot(h1.astype(jnp.bfloat16), w2_ref[...],
                     preferred_element_type=jnp.float32)
        h2 = jnp.maximum(h2 + b2_ref[...], 0.0)
        h3 = jnp.dot(h2.astype(jnp.bfloat16), w3_ref[...],
                     preferred_element_type=jnp.float32)
        o_ref[...] = (h3 + b3_ref[...]).astype(o_ref.dtype)


def neural_net_forward(x, w1, b1, w2, b2, w3, b3, *,
                       tile_b: int = 256, tile_k: int = 512):
    """Forward pass of NeuralNet.

    x : (B, input_size) float32
    w*: (in, out) weights (transposed w.r.t. torch nn.Linear)
    b*: (out,) or (1, out) biases
    Returns (B, num_classes) float32.
    """
    assert tile_b % 8 == 0 and tile_k % 128 == 0
    B, in_size = x.shape
    hidden = w1.shape[1]
    num_classes = w3.shape[1]
    out_dtype = jnp.float32

    # ---- lane / sublane padding -------------------------------------------
    h_pad = _round_up(hidden, 128)
    c_pad = _round_up(num_classes, 128)

    k128 = _round_up(in_size, 128)
    if k128 <= tile_k:
        tk, k_pad = k128, k128                # single K step
    else:
        tk, k_pad = tile_k, _round_up(in_size, tile_k)

    b8 = _round_up(B, 8)
    if b8 <= tile_b:
        tb, b_pad = b8, b8                    # single batch tile (small batch)
    else:
        tb, b_pad = tile_b, _round_up(B, tile_b)

    n_b = b_pad // tb
    n_k = k_pad // tk

    def pad2(a, rows, cols, dtype):
        a = jnp.asarray(a, jnp.float32)
        a = jnp.pad(a, ((0, rows - a.shape[0]), (0, cols - a.shape[1])))
        return a.astype(dtype)

    x_p = pad2(x, b_pad, k_pad, jnp.bfloat16)
    w1_p = pad2(w1, k_pad, h_pad, jnp.bfloat16)
    w2_p = pad2(w2, h_pad, h_pad, jnp.bfloat16)
    w3_p = pad2(w3, h_pad, c_pad, jnp.bfloat16)
    b1_p = pad2(jnp.reshape(b1, (1, -1)), 1, h_pad, jnp.float32)
    b2_p = pad2(jnp.reshape(b2, (1, -1)), 1, h_pad, jnp.float32)
    b3_p = pad2(jnp.reshape(b3, (1, -1)), 1, c_pad, jnp.float32)

    # ---- explicit VMEM budget ---------------------------------------------
    est = (2 * tb * tk * 2                       # x tile, bf16, 2 buffers
           + 2 * tk * h_pad * 2                  # W1 K-slab, bf16, 2 buffers
           + (h_pad * h_pad + h_pad * c_pad) * 2 * 2   # W2, W3 (worst case 2 bufs)
           + (2 * h_pad + c_pad) * 4 * 2         # biases
           + 2 * tb * c_pad * 4                  # out tile, 2 buffers
           + tb * h_pad * 4)                     # h1 accumulator scratch
    vmem_limit = int(min(64 * 1024 * 1024, max(2 * est, 32 * 1024 * 1024)))

    def build(single_buffer_weights: bool):
        def const_spec(shape):
            if single_buffer_weights:
                # Block index never changes -> no point double-buffering.
                return pl.BlockSpec(shape, lambda i, k: (0, 0),
                                    pipeline_mode=pl.Buffered(1))
            return pl.BlockSpec(shape, lambda i, k: (0, 0))

        in_specs = [
            pl.BlockSpec((tb, tk), lambda i, k: (i, k)),      # x tile
            pl.BlockSpec((tk, h_pad), lambda i, k: (k, 0)),   # W1 K-slab
            const_spec((1, h_pad)),                           # b1
            const_spec((h_pad, h_pad)),                       # W2
            const_spec((1, h_pad)),                           # b2
            const_spec((h_pad, c_pad)),                       # W3
            const_spec((1, c_pad)),                           # b3
        ]
        return pl.pallas_call(
            mlp_kernel,
            out_shape=jax.ShapeDtypeStruct((b_pad, c_pad), out_dtype),
            grid_spec=pltpu.PrefetchScalarGridSpec(
                num_scalar_prefetch=0,
                grid=(n_b, n_k),
                in_specs=in_specs,
                out_specs=pl.BlockSpec((tb, c_pad), lambda i, k: (i, 0)),
                scratch_shapes=[pltpu.VMEM((tb, h_pad), jnp.float32)],
            ),
            compiler_params=pltpu.CompilerParams(
                dimension_semantics=("parallel", "arbitrary"),
                vmem_limit_bytes=vmem_limit),
        )

    args = (x_p, w1_p, b1_p, w2_p, b2_p, w3_p, b3_p)
    try:
        out_p = build(True)(*args)
    except Exception:
        # Fallback if single-buffered pipeline_mode is rejected by this
        # jax/Mosaic version: plain double-buffered weight specs.
        out_p = build(False)(*args)

    return out_p[:B, :num_classes]


def init_params(key, input_size, hidden_size, num_classes):
    """Deterministic synthetic init (PyTorch-Linear-like uniform bounds)."""
    ks = jax.random.split(key, 6)

    def lin(kw, kb, fan_in, fan_out):
        bound = 1.0 / jnp.sqrt(jnp.float32(fan_in))
        w = jax.random.uniform(kw, (fan_in, fan_out), jnp.float32, -bound, bound)
        b = jax.random.uniform(kb, (1, fan_out), jnp.float32, -bound, bound)
        return w, b

    w1, b1 = lin(ks[0], ks[1], input_size, hidden_size)
    w2, b2 = lin(ks[2], ks[3], hidden_size, hidden_size)
    w3, b3 = lin(ks[4], ks[5], hidden_size, num_classes)
    return w1, b1, w2, b2, w3, b3


if __name__ == "__main__":
    # Small shapes consistent with the module: bag-of-words input -> classes.
    # (At these toy sizes the kernel is launch-latency bound; the structure
    #  above is what scales to real vocab / batch sizes.)
    batch = 8
    input_size = 64
    hidden_size = 32
    num_classes = 8

    key = jax.random.PRNGKey(0)
    kx, kp = jax.random.split(key)
    x = jax.random.normal(kx, (batch, input_size), jnp.float32)
    w1, b1, w2, b2, w3, b3 = init_params(kp, input_size, hidden_size, num_classes)

    out = neural_net_forward(x, w1, b1, w2, b2, w3, b3)
    out = jax.block_until_ready(out)

    # Pure-JAX f32 reference check of the forward semantics.
    h = jnp.maximum(x @ w1 + b1, 0.0)
    h = jnp.maximum(h @ w2 + b2, 0.0)
    ref = h @ w3 + b3
    assert out.shape == (batch, num_classes)
    # bf16 matmul operands (f32 accumulation) -> ~1e-2-level tolerance.
    assert jnp.allclose(out, ref, atol=5e-2, rtol=5e-2), (
        float(jnp.max(jnp.abs(out - ref))))

    print("KERNEL_OK")
</pallas_src>

<mosaic_0001>
module attributes {stable_mosaic.version = 11 : i64} {
  func.func @mlp_kernel(%arg0: i32, %arg1: i32, %arg2: memref<8x128xbf16, #tpu.memory_space<vmem>>, %arg3: memref<128x128xbf16, #tpu.memory_space<vmem>>, %arg4: memref<1x128xf32, #tpu.memory_space<vmem>>, %arg5: memref<128x128xbf16, #tpu.memory_space<vmem>>, %arg6: memref<1x128xf32, #tpu.memory_space<vmem>>, %arg7: memref<128x128xbf16, #tpu.memory_space<vmem>>, %arg8: memref<1x128xf32, #tpu.memory_space<vmem>>, %arg9: memref<8x128xf32, #tpu.memory_space<vmem>>, %arg10: memref<8x128xf32, #tpu.memory_space<vmem>>) attributes {dimension_semantics = [#tpu.dimension_semantics<parallel>, #tpu.dimension_semantics<arbitrary>], iteration_bounds = array<i64: 1, 1>, scalar_prefetch = 0 : i64, scratch_operands = 1 : i64, tpu.core_type = #tpu.core_type<tc>, window_params = [{transform_indices = @transform_0, window_bounds = array<i64: 8, 128>}, {transform_indices = @transform_1, window_bounds = array<i64: 128, 128>}, {pipeline_mode = #tpu.pipeline_mode<synchronous>, transform_indices = @transform_2, window_bounds = array<i64: 1, 128>}, {pipeline_mode = #tpu.pipeline_mode<synchronous>, transform_indices = @transform_3, window_bounds = array<i64: 128, 128>}, {pipeline_mode = #tpu.pipeline_mode<synchronous>, transform_indices = @transform_4, window_bounds = array<i64: 1, 128>}, {pipeline_mode = #tpu.pipeline_mode<synchronous>, transform_indices = @transform_5, window_bounds = array<i64: 128, 128>}, {pipeline_mode = #tpu.pipeline_mode<synchronous>, transform_indices = @transform_6, window_bounds = array<i64: 1, 128>}, {transform_indices = @transform_7, window_bounds = array<i64: 8, 128>}]} {
    %c0_i32 = arith.constant 0 : i32
    %0 = arith.cmpi eq, %arg1, %c0_i32 : i32
    %1 = arith.extui %0 : i1 to i32
    %c0_i32_0 = arith.constant 0 : i32
    %2 = arith.cmpi ne, %1, %c0_i32_0 : i32
    scf.if %2 {
      %cst_10 = arith.constant 0.000000e+00 : f32
      %12 = vector.broadcast %cst_10 : f32 to vector<8x128xf32>
      %c0_11 = arith.constant 0 : index
      %c0_12 = arith.constant 0 : index
      %13 = vector.load %arg10[%c0_11, %c0_12] : memref<8x128xf32, #tpu.memory_space<vmem>>, vector<8x128xf32>
      tpu.vector_store %arg10[%c0_11, %c0_12], %12 {strides = array<i32>} : memref<8x128xf32, #tpu.memory_space<vmem>>, vector<8x128xf32>,
    } else {
    }
    %c0 = arith.constant 0 : index
    %c0_1 = arith.constant 0 : index
    %3 = vector.load %arg10[%c0, %c0_1] : memref<8x128xf32, #tpu.memory_space<vmem>>, vector<8x128xf32>
    %c0_2 = arith.constant 0 : index
    %c0_3 = arith.constant 0 : index
    %4 = vector.load %arg2[%c0_2, %c0_3] : memref<8x128xbf16, #tpu.memory_space<vmem>>, vector<8x128xbf16>
    %c0_4 = arith.constant 0 : index
    %c0_5 = arith.constant 0 : index
    %5 = vector.load %arg3[%c0_4, %c0_5] : memref<128x128xbf16, #tpu.memory_space<vmem>>, vector<128x128xbf16>
    %cst = arith.constant dense<0.000000e+00> : vector<8x128xf32>
    %6 = tpu.matmul %4, %5, %cst {dimension_numbers = #tpu.dot_dimension_numbers<[1], [0], [0], [1], [0, 0, 1, 1], [], []>} : vector<8x128xbf16>, vector<128x128xbf16>, vector<8x128xf32> -> vector<8x128xf32>
    %7 = arith.addf %3, %6 : vector<8x128xf32>
    %c0_6 = arith.constant 0 : index
    %c0_7 = arith.constant 0 : index
    %8 = vector.load %arg10[%c0_6, %c0_7] : memref<8x128xf32, #tpu.memory_space<vmem>>, vector<8x128xf32>
    tpu.vector_store %arg10[%c0_6, %c0_7], %7 {strides = array<i32>} : memref<8x128xf32, #tpu.memory_space<vmem>>, vector<8x128xf32>,
    %c0_i32_8 = arith.constant 0 : i32
    %9 = arith.cmpi eq, %arg1, %c0_i32_8 : i32
    %10 = arith.extui %9 : i1 to i32
    %c0_i32_9 = arith.constant 0 : i32
    %11 = arith.cmpi ne, %10, %c0_i32_9 : i32
    scf.if %11 {
      %c0_10 = arith.constant 0 : index
      %c0_11 = arith.constant 0 : index
      %12 = vector.load %arg10[%c0_10, %c0_11] : memref<8x128xf32, #tpu.memory_space<vmem>>, vector<8x128xf32>
      %c0_12 = arith.constant 0 : index
      %c0_13 = arith.constant 0 : index
      %13 = vector.load %arg4[%c0_12, %c0_13] : memref<1x128xf32, #tpu.memory_space<vmem>>, vector<1x128xf32>
      %14 = vector.broadcast %13 : vector<1x128xf32> to vector<8x128xf32>
      %15 = arith.addf %12, %14 : vector<8x128xf32>
      %cst_14 = arith.constant 0.000000e+00 : f32
      %16 = vector.broadcast %cst_14 : f32 to vector<8x128xf32>
      %17 = arith.maximumf %15, %16 : vector<8x128xf32>
      %18 = arith.truncf %17 : vector<8x128xf32> to vector<8x128xbf16>
      %c0_15 = arith.constant 0 : index
      %c0_16 = arith.constant 0 : index
      %19 = vector.load %arg5[%c0_15, %c0_16] : memref<128x128xbf16, #tpu.memory_space<vmem>>, vector<128x128xbf16>
      %cst_17 = arith.constant dense<0.000000e+00> : vector<8x128xf32>
      %20 = tpu.matmul %18, %19, %cst_17 {dimension_numbers = #tpu.dot_dimension_numbers<[1], [0], [0], [1], [0, 0, 1, 1], [], []>} : vector<8x128xbf16>, vector<128x128xbf16>, vector<8x128xf32> -> vector<8x128xf32>
      %c0_18 = arith.constant 0 : index
      %c0_19 = arith.constant 0 : index
      %21 = vector.load %arg6[%c0_18, %c0_19] : memref<1x128xf32, #tpu.memory_space<vmem>>, vector<1x128xf32>
      %22 = vector.broadcast %21 : vector<1x128xf32> to vector<8x128xf32>
      %23 = arith.addf %20, %22 : vector<8x128xf32>
      %cst_20 = arith.constant 0.000000e+00 : f32
      %24 = vector.broadcast %cst_20 : f32 to vector<8x128xf32>
      %25 = arith.maximumf %23, %24 : vector<8x128xf32>
      %26 = arith.truncf %25 : vector<8x128xf32> to vector<8x128xbf16>
      %c0_21 = arith.constant 0 : index
      %c0_22 = arith.constant 0 : index
      %27 = vector.load %arg7[%c0_21, %c0_22] : memref<128x128xbf16, #tpu.memory_space<vmem>>, vector<128x128xbf16>
      %cst_23 = arith.constant dense<0.000000e+00> : vector<8x128xf32>
      %28 = tpu.matmul %26, %27, %cst_23 {dimension_numbers = #tpu.dot_dimension_numbers<[1], [0], [0], [1], [0, 0, 1, 1], [], []>} : vector<8x128xbf16>, vector<128x128xbf16>, vector<8x128xf32> -> vector<8x128xf32>
      %c0_24 = arith.constant 0 : index
      %c0_25 = arith.constant 0 : index
      %29 = vector.load %arg8[%c0_24, %c0_25] : memref<1x128xf32, #tpu.memory_space<vmem>>, vector<1x128xf32>
      %30 = vector.broadcast %29 : vector<1x128xf32> to vector<8x128xf32>
      %31 = arith.addf %28, %30 : vector<8x128xf32>
      %c0_26 = arith.constant 0 : index
      %c0_27 = arith.constant 0 : index
      %32 = vector.load %arg9[%c0_26, %c0_27] : memref<8x128xf32, #tpu.memory_space<vmem>>, vector<8x128xf32>
      tpu.vector_store %arg9[%c0_26, %c0_27], %31 {strides = array<i32>} : memref<8x128xf32, #tpu.memory_space<vmem>>, vector<8x128xf32>,
    } else {
    }
    return
  }
  func.func @transform_0(%arg0: i32, %arg1: i32) -> (i32, i32) {
    %c0_i32 = arith.constant 0 : i32
    return %arg0, %arg1 : i32, i32
  }
  func.func @transform_1(%arg0: i32, %arg1: i32) -> (i32, i32) {
    %c0_i32 = arith.constant 0 : i32
    %c0_i32_0 = arith.constant 0 : i32
    return %arg1, %c0_i32 : i32, i32
  }
  func.func @transform_2(%arg0: i32, %arg1: i32) -> (i32, i32) {
    %c0_i32 = arith.constant 0 : i32
    %c0_i32_0 = arith.constant 0 : i32
    %c0_i32_1 = arith.constant 0 : i32
    return %c0_i32, %c0_i32_0 : i32, i32
  }
  func.func @transform_3(%arg0: i32, %arg1: i32) -> (i32, i32) {
    %c0_i32 = arith.constant 0 : i32
    %c0_i32_0 = arith.constant 0 : i32
    %c0_i32_1 = arith.constant 0 : i32
    return %c0_i32, %c0_i32_0 : i32, i32
  }
  func.func @transform_4(%arg0: i32, %arg1: i32) -> (i32, i32) {
    %c0_i32 = arith.constant 0 : i32
    %c0_i32_0 = arith.constant 0 : i32
    %c0_i32_1 = arith.constant 0 : i32
    return %c0_i32, %c0_i32_0 : i32, i32
  }
  func.func @transform_5(%arg0: i32, %arg1: i32) -> (i32, i32) {
    %c0_i32 = arith.constant 0 : i32
    %c0_i32_0 = arith.constant 0 : i32
    %c0_i32_1 = arith.constant 0 : i32
    return %c0_i32, %c0_i32_0 : i32, i32
  }
  func.func @transform_6(%arg0: i32, %arg1: i32) -> (i32, i32) {
    %c0_i32 = arith.constant 0 : i32
    %c0_i32_0 = arith.constant 0 : i32
    %c0_i32_1 = arith.constant 0 : i32
    return %c0_i32, %c0_i32_0 : i32, i32
  }
  func.func @transform_7(%arg0: i32, %arg1: i32) -> (i32, i32) {
    %c0_i32 = arith.constant 0 : i32
    %c0_i32_0 = arith.constant 0 : i32
    return %arg0, %c0_i32 : i32, i32
  }
}

module attributes {stable_mosaic.version = 11 : i64} {
  func.func @mlp_kernel(%arg0: i32, %arg1: i32, %arg2: memref<8x128xbf16, #tpu.memory_space<vmem>>, %arg3: memref<128x128xbf16, #tpu.memory_space<vmem>>, %arg4: memref<1x128xf32, #tpu.memory_space<vmem>>, %arg5: memref<128x128xbf16, #tpu.memory_space<vmem>>, %arg6: memref<1x128xf32, #tpu.memory_space<vmem>>, %arg7: memref<128x128xbf16, #tpu.memory_space<vmem>>, %arg8: memref<1x128xf32, #tpu.memory_space<vmem>>, %arg9: memref<8x128xf32, #tpu.memory_space<vmem>>, %arg10: memref<8x128xf32, #tpu.memory_space<vmem>>) attributes {dimension_semantics = [#tpu.dimension_semantics<parallel>, #tpu.dimension_semantics<arbitrary>], iteration_bounds = array<i64: 1, 1>, scalar_prefetch = 0 : i64, scratch_operands = 1 : i64, tpu.core_type = #tpu.core_type<tc>, window_params = [{transform_indices = @transform_0, window_bounds = array<i64: 8, 128>}, {transform_indices = @transform_1, window_bounds = array<i64: 128, 128>}, {pipeline_mode = #tpu.pipeline_mode<synchronous>, transform_indices = @transform_2, window_bounds = array<i64: 1, 128>}, {pipeline_mode = #tpu.pipeline_mode<synchronous>, transform_indices = @transform_3, window_bounds = array<i64: 128, 128>}, {pipeline_mode = #tpu.pipeline_mode<synchronous>, transform_indices = @transform_4, window_bounds = array<i64: 1, 128>}, {pipeline_mode = #tpu.pipeline_mode<synchronous>, transform_indices = @transform_5, window_bounds = array<i64: 128, 128>}, {pipeline_mode = #tpu.pipeline_mode<synchronous>, transform_indices = @transform_6, window_bounds = array<i64: 1, 128>}, {transform_indices = @transform_7, window_bounds = array<i64: 8, 128>}]} {
    %c0_i32 = arith.constant 0 : i32
    %0 = arith.cmpi eq, %arg1, %c0_i32 : i32
    %1 = arith.extui %0 : i1 to i32
    %c0_i32_0 = arith.constant 0 : i32
    %2 = arith.cmpi ne, %1, %c0_i32_0 : i32
    scf.if %2 {
      %cst_10 = arith.constant 0.000000e+00 : f32
      %12 = vector.broadcast %cst_10 : f32 to vector<8x128xf32>
      %c0_11 = arith.constant 0 : index
      %c0_12 = arith.constant 0 : index
      %13 = vector.load %arg10[%c0_11, %c0_12] : memref<8x128xf32, #tpu.memory_space<vmem>>, vector<8x128xf32>
      tpu.vector_store %arg10[%c0_11, %c0_12], %12 {strides = array<i32>} : memref<8x128xf32, #tpu.memory_space<vmem>>, vector<8x128xf32>,
    } else {
    }
    %c0 = arith.constant 0 : index
    %c0_1 = arith.constant 0 : index
    %3 = vector.load %arg10[%c0, %c0_1] : memref<8x128xf32, #tpu.memory_space<vmem>>, vector<8x128xf32>
    %c0_2 = arith.constant 0 : index
    %c0_3 = arith.constant 0 : index
    %4 = vector.load %arg2[%c0_2, %c0_3] : memref<8x128xbf16, #tpu.memory_space<vmem>>, vector<8x128xbf16>
    %c0_4 = arith.constant 0 : index
    %c0_5 = arith.constant 0 : index
    %5 = vector.load %arg3[%c0_4, %c0_5] : memref<128x128xbf16, #tpu.memory_space<vmem>>, vector<128x128xbf16>
    %cst = arith.constant dense<0.000000e+00> : vector<8x128xf32>
    %6 = tpu.matmul %4, %5, %cst {dimension_numbers = #tpu.dot_dimension_numbers<[1], [0], [0], [1], [0, 0, 1, 1], [], []>} : vector<8x128xbf16>, vector<128x128xbf16>, vector<8x128xf32> -> vector<8x128xf32>
    %7 = arith.addf %3, %6 : vector<8x128xf32>
    %c0_6 = arith.constant 0 : index
    %c0_7 = arith.constant 0 : index
    %8 = vector.load %arg10[%c0_6, %c0_7] : memref<8x128xf32, #tpu.memory_space<vmem>>, vector<8x128xf32>
    tpu.vector_store %arg10[%c0_6, %c0_7], %7 {strides = array<i32>} : memref<8x128xf32, #tpu.memory_space<vmem>>, vector<8x128xf32>,
    %c0_i32_8 = arith.constant 0 : i32
    %9 = arith.cmpi eq, %arg1, %c0_i32_8 : i32
    %10 = arith.extui %9 : i1 to i32
    %c0_i32_9 = arith.constant 0 : i32
    %11 = arith.cmpi ne, %10, %c0_i32_9 : i32
    scf.if %11 {
      %c0_10 = arith.constant 0 : index
      %c0_11 = arith.constant 0 : index
      %12 = vector.load %arg10[%c0_10, %c0_11] : memref<8x128xf32, #tpu.memory_space<vmem>>, vector<8x128xf32>
      %c0_12 = arith.constant 0 : index
      %c0_13 = arith.constant 0 : index
      %13 = vector.load %arg4[%c0_12, %c0_13] : memref<1x128xf32, #tpu.memory_space<vmem>>, vector<1x128xf32>
      %14 = vector.broadcast %13 : vector<1x128xf32> to vector<8x128xf32>
      %15 = arith.addf %12, %14 : vector<8x128xf32>
      %cst_14 = arith.constant 0.000000e+00 : f32
      %16 = vector.broadcast %cst_14 : f32 to vector<8x128xf32>
      %17 = arith.maximumf %15, %16 : vector<8x128xf32>
      %18 = arith.truncf %17 : vector<8x128xf32> to vector<8x128xbf16>
      %c0_15 = arith.constant 0 : index
      %c0_16 = arith.constant 0 : index
      %19 = vector.load %arg5[%c0_15, %c0_16] : memref<128x128xbf16, #tpu.memory_space<vmem>>, vector<128x128xbf16>
      %cst_17 = arith.constant dense<0.000000e+00> : vector<8x128xf32>
      %20 = tpu.matmul %18, %19, %cst_17 {dimension_numbers = #tpu.dot_dimension_numbers<[1], [0], [0], [1], [0, 0, 1, 1], [], []>} : vector<8x128xbf16>, vector<128x128xbf16>, vector<8x128xf32> -> vector<8x128xf32>
      %c0_18 = arith.constant 0 : index
      %c0_19 = arith.constant 0 : index
      %21 = vector.load %arg6[%c0_18, %c0_19] : memref<1x128xf32, #tpu.memory_space<vmem>>, vector<1x128xf32>
      %22 = vector.broadcast %21 : vector<1x128xf32> to vector<8x128xf32>
      %23 = arith.addf %20, %22 : vector<8x128xf32>
      %cst_20 = arith.constant 0.000000e+00 : f32
      %24 = vector.broadcast %cst_20 : f32 to vector<8x128xf32>
      %25 = arith.maximumf %23, %24 : vector<8x128xf32>
      %26 = arith.truncf %25 : vector<8x128xf32> to vector<8x128xbf16>
      %c0_21 = arith.constant 0 : index
      %c0_22 = arith.constant 0 : index
      %27 = vector.load %arg7[%c0_21, %c0_22] : memref<128x128xbf16, #tpu.memory_space<vmem>>, vector<128x128xbf16>
      %cst_23 = arith.constant dense<0.000000e+00> : vector<8x128xf32>
      %28 = tpu.matmul %26, %27, %cst_23 {dimension_numbers = #tpu.dot_dimension_numbers<[1], [0], [0], [1], [0, 0, 1, 1], [], []>} : vector<8x128xbf16>, vector<128x128xbf16>, vector<8x128xf32> -> vector<8x128xf32>
      %c0_24 = arith.constant 0 : index
      %c0_25 = arith.constant 0 : index
      %29 = vector.load %arg8[%c0_24, %c0_25] : memref<1x128xf32, #tpu.memory_space<vmem>>, vector<1x128xf32>
      %30 = vector.broadcast %29 : vector<1x128xf32> to vector<8x128xf32>
      %31 = arith.addf %28, %30 : vector<8x128xf32>
      %c0_26 = arith.constant 0 : index
      %c0_27 = arith.constant 0 : index
      %32 = vector.load %arg9[%c0_26, %c0_27] : memref<8x128xf32, #tpu.memory_space<vmem>>, vector<8x128xf32>
      tpu.vector_store %arg9[%c0_26, %c0_27], %31 {strides = array<i32>} : memref<8x128xf32, #tpu.memory_space<vmem>>, vector<8x128xf32>,
    } else {
    }
    return
  }
  func.func @transform_0(%arg0: i32, %arg1: i32) -> (i32, i32) {
    %c0_i32 = arith.constant 0 : i32
    return %arg0, %arg1 : i32, i32
  }
  func.func @transform_1(%arg0: i32, %arg1: i32) -> (i32, i32) {
    %c0_i32 = arith.constant 0 : i32
    %c0_i32_0 = arith.constant 0 : i32
    return %arg1, %c0_i32 : i32, i32
  }
  func.func @transform_2(%arg0: i32, %arg1: i32) -> (i32, i32) {
    %c0_i32 = arith.constant 0 : i32
    %c0_i32_0 = arith.constant 0 : i32
    %c0_i32_1 = arith.constant 0 : i32
    return %c0_i32, %c0_i32_0 : i32, i32
  }
  func.func @transform_3(%arg0: i32, %arg1: i32) -> (i32, i32) {
    %c0_i32 = arith.constant 0 : i32
    %c0_i32_0 = arith.constant 0 : i32
    %c0_i32_1 = arith.constant 0 : i32
    return %c0_i32, %c0_i32_0 : i32, i32
  }
  func.func @transform_4(%arg0: i32, %arg1: i32) -> (i32, i32) {
    %c0_i32 = arith.constant 0 : i32
    %c0_i32_0 = arith.constant 0 : i32
    %c0_i32_1 = arith.constant 0 : i32
    return %c0_i32, %c0_i32_0 : i32, i32
  }
  func.func @transform_5(%arg0: i32, %arg1: i32) -> (i32, i32) {
    %c0_i32 = arith.constant 0 : i32
    %c0_i32_0 = arith.constant 0 : i32
    %c0_i32_1 = arith.constant 0 : i32
    return %c0_i32, %c0_i32_0 : i32, i32
  }
  func.func @transform_6(%arg0: i32, %arg1: i32) -> (i32, i32) {
    %c0_i32 = arith.constant 0 : i32
    %c0_i32_0 = arith.constant 0 : i32
    %c0_i32_1 = arith.constant 0 : i32
    return %c0_i32, %c0_i32_0 : i32, i32
  }
  func.func @transform_7(%arg0: i32, %arg1: i32) -> (i32, i32) {
    %c0_i32 = arith.constant 0 : i32
    %c0_i32_0 = arith.constant 0 : i32
    return %arg0, %c0_i32 : i32, i32
  }
}

</mosaic_0001>

<bundles_post_ra>
// kernel: tpu_custom_call.1
= control target key start
LH: loop header
LB: loop body
LE: loop exit
PB: predicated region body
PF: predicated region fallthrough
CT: control target
= control target key end

     0   :  { %12 = vsyncpa [#allocation4], 0  ;;  %s817_s0 = inlined_call_operand.hbm [shape: bf16[8,128], index: 0, kind: input, shape index: {}]   ;;  %s818_s1 = inlined_call_operand.hbm [shape: bf16[128,128], index: 1, kind: input, shape index: {}]   ;;  %s819_s2 = inlined_call_operand.vmem [shape: f32[1,128], index: 2, kind: input, shape index: {}]   ;;  %s820_s3 = inlined_call_operand.hbm [shape: bf16[128,128], index: 3, kind: input, shape index: {}]   ;;  %s821_s4 = inlined_call_operand.vmem [shape: f32[1,128], index: 4, kind: input, shape index: {}]   ;;  %s822_s5 = inlined_call_operand.hbm [shape: bf16[128,128], index: 5, kind: input, shape index: {}]   ;;  %s823_s6 = inlined_call_operand.vmem [shape: f32[1,128], index: 6, kind: input, shape index: {}]   ;;  %s824_s7 = inlined_call_operand.hbm [shape: f32[8,128], index: 7, kind: output, shape index: {}]  }
   0x1   :  { %13 = vsyncpa [#allocation7], 0 }
   0x2   :  { %14 = vsyncpa [#allocation10], 0 }
   0x3   :  { %15 = vsyncpa [#allocation5], 0  ;;  %s705_s24 = smov [#allocation6]  }
   0x4   :  { %s31_s25 = sshll.u32 %s705_s24, 4  ;;  %s32_s25 = int_to_ptr.vmem [resolvable:$true] %s31_s25 }
   0x5   :  { %s605_s26 = scalar_lea.vmem %s32_s25, 1024  ;;  %p610_p1 = scmp.lt.s32.totalorder %s32_s25, %s32_s25 }
   0x6   :  { %p606_p0 = scmp.ne.s32.totalorder %s32_s25, %s605_s26  ;;  %p611_p2 = scmp.lt.s32.totalorder %s605_s26, %s605_s26 }
   0x8   :  { %p612_p3 = por %p611_p2, %p610_p1 }
   0xa   :  { %p613_p4 = pnand %p612_p3, %p606_p0 }
   0xc   :  { %616 = shalt.err (!%p613_p4)
}
   0xd   :  { %s706_s27 = smov 64   ;;  %s707_s28 = smov 4  }
   0xe   :  { %37 = dma.hbm_to_vmem [thread:$0]  %s818_s1, 1024, %s32_s25, [#allocation7], %s706_s27, %s706_s27, %s707_s28  }
   0xf   :  { %s708_s8 = smov [#allocation3]   ;;  %s709_s10 = smov [#allocation8]  }
  0x10   :  { %s22_s9 = sshll.u32 %s708_s8, 4  ;;  %s45_s11 = sshll.u32 %s709_s10, 4  ;;  %s23_s9 = int_to_ptr.vmem [resolvable:$true] %s22_s9  ;;  %s46_s11 = int_to_ptr.vmem [resolvable:$true] %s45_s11 }
  0x11   :  { %s625_s12 = scalar_lea.vmem %s23_s9, 64  ;;  %p630_p6 = scmp.lt.s32.totalorder %s23_s9, %s23_s9 }
  0x12   :  { %p626_p5 = scmp.ne.s32.totalorder %s23_s9, %s625_s12  ;;  %p631_p7 = scmp.lt.s32.totalorder %s625_s12, %s625_s12 }
  0x14   :  { %p632_p8 = por %p631_p7, %p630_p6 }
  0x16   :  { %p633_p9 = pnand %p632_p8, %p626_p5 }
  0x18   :  { %636 = shalt.err (!%p633_p9)
}
  0x19   :  { %25 = dma.hbm_to_vmem [thread:$0]  %s817_s0, 64, %s23_s9, [#allocation4]  }
  0x1a   :  { %s645_s15 = scalar_lea.vmem %s46_s11, 1024  ;;  %p650_p11 = scmp.lt.s32.totalorder %s46_s11, %s46_s11 }
  0x1b   :  { %p646_p10 = scmp.ne.s32.totalorder %s46_s11, %s645_s15  ;;  %p651_p12 = scmp.lt.s32.totalorder %s645_s15, %s645_s15 }
  0x1d   :  { %p652_p13 = por %p651_p12, %p650_p11 }
  0x1f   :  { %p653_p0 = pnand %p652_p13, %p646_p10 }
  0x21   :  { %656 = shalt.err (!%p653_p0)
}
  0x22   :  { %51 = dma.hbm_to_vmem [thread:$0]  %s820_s3, 1024, %s46_s11, [#allocation7], %s706_s27, %s706_s27, %s707_s28  }
  0x23   :  { %s710_s17 = smov [#allocation9]  }
  0x24   :  { %s59_s18 = sshll.u32 %s710_s17, 4  ;;  %s60_s18 = int_to_ptr.vmem [resolvable:$true] %s59_s18 }
  0x25   :  { %s665_s19 = scalar_lea.vmem %s60_s18, 1024  ;;  %p670_p2 = scmp.lt.s32.totalorder %s60_s18, %s60_s18 }
  0x26   :  { %p666_p1 = scmp.ne.s32.totalorder %s60_s18, %s665_s19  ;;  %p671_p3 = scmp.lt.s32.totalorder %s665_s19, %s665_s19 }
  0x28   :  { %p672_p4 = por %p671_p3, %p670_p2 }
  0x2a   :  { %p673_p5 = pnand %p672_p4, %p666_p1 }
  0x2c   :  { %676 = shalt.err (!%p673_p5)
}
  0x2d   :  { %65 = dma.hbm_to_vmem [thread:$0]  %s822_s5, 1024, %s60_s18, [#allocation10], %s706_s27, %s706_s27, %s707_s28  }
  0x2e   :  { %697 = dma.done.wait [#allocation4], 64  }
  0x2f   :  { %698 = vsyncadd [#allocation4], 4294967232 }
  0x30   :  { %699 = dma.done.wait [#allocation7], 2048  }
  0x31   :  { %700 = vsyncadd [#allocation7], 4294965248 }
  0x32   :  { %701 = dma.done.wait [#allocation10], 1024  }
  0x33   :  { %702 = vsyncadd [#allocation10], 4294966272  ;;  %v711_v0 = vmov 0.0   ;;  %vm712_vm0 = vmmov 0   ;;  %v573_v1 = vld [vmem:[#allocation6 + $0x38] sm:$0xff]   ;;  %v574_v2 = vld [vmem:[#allocation6 + $0x30] sm:$0xff]  }
  0x34   :  { %504 = vmatprep.subr.bf16.mxu0 %v711_v0  ;;  %520 = vmatprep.mubr.msk.bf16.mxu0 %vm712_vm0, %v711_v0  ;;  %v575_v3 = vld [vmem:[#allocation6 + $0x28] sm:$0xff]   ;;  %v581_v4 = vld [vmem:[#allocation8 + $0x38] sm:$0xff]   ;;  %v576_v5 = vld [vmem:[#allocation6 + $0x20] sm:$0xff]   ;;  %s713_s24 = smov [#allocation11]  }
  0x35   :  { %524 = vmatprep.subr.bf16.mxu1 %v711_v0  ;;  %540 = vmatprep.mubr.msk.bf16.mxu1 %vm712_vm0, %v711_v0  ;;  %v582_v6 = vld [vmem:[#allocation8 + $0x30] sm:$0xff]   ;;  %v577_v7 = vld [vmem:[#allocation6 + $0x18] sm:$0xff]   ;;  %v583_v8 = vld [vmem:[#allocation8 + $0x28] sm:$0xff]   ;;  %s439_s25 = sshll.u32 %s713_s24, 4  ;;  %s440_s25 = int_to_ptr.vmem [resolvable:$true] %s439_s25 }
  0x36   :  { %505 = vmatpush3.bf16.msra.mxu0 %v573_v1  ;;  %525 = vmatpush3.bf16.msra.mxu1 %v581_v4  ;;  %v578_v9 = vld [vmem:[#allocation6 + $0x10] sm:$0xff]   ;;  %v584_v10 = vld [vmem:[#allocation8 + $0x20] sm:$0xff]   ;;  %v579_v11 = vld [vmem:[#allocation6 + $0x8] sm:$0xff]   ;;  %p682_p7 = scmp.lt.s32.totalorder %s440_s25, %s440_s25 }
  0x37   :  { %506 = vmatprep.subr.bf16.mxu0 %v711_v0  ;;  %526 = vmatprep.subr.bf16.mxu1 %v711_v0  ;;  %v585_v12 = vld [vmem:[#allocation8 + $0x18] sm:$0xff]   ;;  %v580_v13 = vld [vmem:[#allocation6] sm:$0xff]   ;;  %v586_v14 = vld [vmem:[#allocation8 + $0x10] sm:$0xff]  }
  0x38   :  { %v87_v15 = vld [vmem:[#allocation3] sm:$0xf]  ;;  %v587_v16 = vld [vmem:[#allocation8 + $0x8] sm:$0xff]   ;;  %v588_v17 = vld [vmem:[#allocation8] sm:$0xff]  }
  0x39   :  { %v589_v18 = vld [vmem:[#allocation9 + $0x38] sm:$0xff]   ;;  %v590_v19 = vld [vmem:[#allocation9 + $0x30] sm:$0xff]   ;;  %v591_v20 = vld [vmem:[#allocation9 + $0x28] sm:$0xff]  }
  0x3a   :  { %507 = vmatpush3.bf16.msra.mxu0 %v574_v2  ;;  %527 = vmatpush3.bf16.msra.mxu1 %v582_v6  ;;  %v592_v21 = vld [vmem:[#allocation9 + $0x20] sm:$0xff]   ;;  %v593_v22 = vld [vmem:[#allocation9 + $0x18] sm:$0xff]   ;;  %v594_v23 = vld [vmem:[#allocation9 + $0x10] sm:$0xff]  }
  0x3b   :  { %508 = vmatprep.subr.bf16.mxu0 %v711_v0  ;;  %528 = vmatprep.subr.bf16.mxu1 %v711_v0  ;;  %v458_v24 = vld [vmem:[%s819_s2] ss:$0 sm:$0xff]  ;;  %v595_v32 = vld [vmem:[#allocation9 + $0x8] sm:$0xff]   ;;  %v596_v33 = vld [vmem:[#allocation9] sm:$0xff]  }
  0x3c   :  { %v459_v34 = vld [vmem:[%s821_s4] ss:$0 sm:$0xff]  ;;  %s677_s4 = scalar_lea.vmem %s440_s25, 128 }
  0x3d   :  { %v468_v42 = vld [vmem:[%s823_s6] ss:$0 sm:$0xff]  ;;  %p678_p6 = scmp.ne.s32.totalorder %s440_s25, %s677_s4  ;;  %p683_p8 = scmp.lt.s32.totalorder %s677_s4, %s677_s4 }
  0x3e   :  { %509 = vmatpush3.bf16.msra.mxu0 %v575_v3  ;;  %529 = vmatpush3.bf16.msra.mxu1 %v583_v8 }
  0x3f   :  { %510 = vmatprep.subr.bf16.mxu0 %v711_v0  ;;  %530 = vmatprep.subr.bf16.mxu1 %v711_v0  ;;  %p684_p9 = por %p683_p8, %p682_p7 }
  0x41   :  { %p685_p10 = pnand %p684_p9, %p678_p6 }
  0x42   :  { %511 = vmatpush3.bf16.msra.mxu0 %v576_v5  ;;  %531 = vmatpush3.bf16.msra.mxu1 %v584_v10 }
  0x43   :  { %512 = vmatprep.subr.bf16.mxu0 %v711_v0  ;;  %532 = vmatprep.subr.bf16.mxu1 %v711_v0 }
  0x46   :  { %513 = vmatpush3.bf16.msra.mxu0 %v577_v7  ;;  %533 = vmatpush3.bf16.msra.mxu1 %v585_v12 }
  0x47   :  { %514 = vmatprep.subr.bf16.mxu0 %v711_v0  ;;  %534 = vmatprep.subr.bf16.mxu1 %v711_v0 }
  0x4a   :  { %515 = vmatpush3.bf16.msra.mxu0 %v578_v9  ;;  %535 = vmatpush3.bf16.msra.mxu1 %v586_v14 }
  0x4b   :  { %516 = vmatprep.subr.bf16.mxu0 %v711_v0  ;;  %536 = vmatprep.subr.bf16.mxu1 %v711_v0 }
  0x4e   :  { %517 = vmatpush3.bf16.msra.mxu0 %v579_v11  ;;  %537 = vmatpush3.bf16.msra.mxu1 %v587_v16 }
  0x4f   :  { %518 = vmatprep.subr.bf16.mxu0 %v711_v0  ;;  %538 = vmatprep.subr.bf16.mxu1 %v711_v0 }
  0x52   :  { %519 = vmatpush3.bf16.msra.mxu0 %v580_v13  ;;  %539 = vmatpush3.bf16.msra.mxu1 %v588_v17 }
  0x53   :  { %544 = vmatprep.subr.bf16.mxu0 %v711_v0 }
  0x55   :  { %521 = vmatmul.mubr.bf16.vlgmr.msra.gmra.mxu0 %v87_v15 }
  0x56   :  { %560 = vmatprep.mubr.msk.bf16.mxu0 %vm712_vm0, %v711_v0  ;;  %545 = vmatpush3.bf16.msra.mxu0 %v589_v18 }
  0x57   :  { %546 = vmatprep.subr.bf16.mxu0 %v711_v0 }
  0x5a   :  { %547 = vmatpush3.bf16.msra.mxu0 %v590_v19 }
  0x5b   :  { %548 = vmatprep.subr.bf16.mxu0 %v711_v0 }
  0x5e   :  { %549 = vmatpush3.bf16.msra.mxu0 %v591_v20 }
  0x5f   :  { %550 = vmatprep.subr.bf16.mxu0 %v711_v0 }
  0x62   :  { %551 = vmatpush3.bf16.msra.mxu0 %v592_v21 }
  0x63   :  { %552 = vmatprep.subr.bf16.mxu0 %v711_v0 }
  0x66   :  { %553 = vmatpush3.bf16.msra.mxu0 %v593_v22 }
  0x67   :  { %554 = vmatprep.subr.bf16.mxu0 %v711_v0 }
  0x6a   :  { %555 = vmatpush3.bf16.msra.mxu0 %v594_v23 }
  0x6b   :  { %556 = vmatprep.subr.bf16.mxu0 %v711_v0 }
  0x6e   :  { %557 = vmatpush3.bf16.msra.mxu0 %v595_v32 }
  0x6f   :  { %558 = vmatprep.subr.bf16.mxu0 %v711_v0 }
  0x72   :  { %559 = vmatpush3.bf16.msra.mxu0 %v596_v33 }
 0x115   :  { %v186_v25 = vpop.f32.mrf.mxu0 }
 0x116   :  { %v205_v26 = vadd.f32 %v458_v24, %v186_v25 }
 0x117   :  { %v522_v27 = vpop.f32.mrf.mxu0 }
 0x118   :  { %v206_v28 = vmax.f32 %v205_v26, 0.0 }
 0x119   :  { %v189_v29 = vpop.f32.mrf.mxu0 }
 0x11a   :  { %v207_v30 = vpack.c.bf16 %v206_v28, %v206_v28 }
 0x11b   :  { %v523_v31 = vpop.f32.mrf.mxu0 }
 0x11c   :  { %541 = vmatmul.mubr.bf16.vlgmr.msra.gmra.mxu1 %v207_v30 }
 0x1dc   :  { %v313_v35 = vpop.f32.mrf.mxu1 }
 0x1dd   :  { %v314_v36 = vadd.f32 %v459_v34, %v313_v35 }
 0x1de   :  { %v542_v37 = vpop.f32.mrf.mxu1 }
 0x1df   :  { %v319_v38 = vmax.f32 %v314_v36, 0.0 }
 0x1e0   :  { %v316_v39 = vpop.f32.mrf.mxu1 }
 0x1e1   :  { %v320_v40 = vpack.c.bf16 %v319_v38, %v319_v38 }
 0x1e2   :  { %v543_v41 = vpop.f32.mrf.mxu1 }
 0x1e3   :  { %561 = vmatmul.mubr.bf16.vlgmr.msra.gmra.mxu0 %v320_v40 }
 0x2a3   :  { %v426_v43 = vpop.f32.mrf.mxu0 }
 0x2a4   :  { %v427_v44 = vadd.f32 %v468_v42, %v426_v43 }
 0x2a5   :  { %v562_v45 = vpop.f32.mrf.mxu0 }
 0x2a6   :  { %432 = vst [vmem:[#allocation11] sm:$0xff] %v427_v44 }
 0x2a7   :  { %v429_v46 = vpop.f32.mrf.mxu0 }
 0x2a8   :  { %688 = shalt.err (!%p685_p10)
}
 0x2a9   :  { %442 = dma.vmem_to_hbm [thread:$0]  %s440_s25, 128, %s824_s7, [#allocation5]   ;;  %v563_v47 = vpop.f32.mrf.mxu0 }
 0x2aa   :  { %703 = dma.done.wait [#allocation5], 128  }
 0x2ab   :  { %704 = vsyncadd [#allocation5], 4294967168 }
 0x2ac   :  { %446 = vsyncpa [#allocation4], 1 }
 0x2ad   :  { %447 = vsyncpa [#allocation7], 1 }
 0x2ae   :  { %448 = vsyncpa [#allocation10], 1 }
 0x2af   :  { %449 = vsyncpa [#allocation5], 1 }

// kernel: tpu_custom_call.1
= control target key start
LH: loop header
LB: loop body
LE: loop exit
PB: predicated region body
PF: predicated region fallthrough
CT: control target
= control target key end

     0   :  { %12 = vsyncpa [#allocation4], 0  ;;  %s817_s0 = inlined_call_operand.hbm [shape: bf16[8,128], index: 0, kind: input, shape index: {}]   ;;  %s818_s1 = inlined_call_operand.hbm [shape: bf16[128,128], index: 1, kind: input, shape index: {}]   ;;  %s819_s2 = inlined_call_operand.vmem [shape: f32[1,128], index: 2, kind: input, shape index: {}]   ;;  %s820_s3 = inlined_call_operand.hbm [shape: bf16[128,128], index: 3, kind: input, shape index: {}]   ;;  %s821_s4 = inlined_call_operand.vmem [shape: f32[1,128], index: 4, kind: input, shape index: {}]   ;;  %s822_s5 = inlined_call_operand.hbm [shape: bf16[128,128], index: 5, kind: input, shape index: {}]   ;;  %s823_s6 = inlined_call_operand.vmem [shape: f32[1,128], index: 6, kind: input, shape index: {}]   ;;  %s824_s7 = inlined_call_operand.hbm [shape: f32[8,128], index: 7, kind: output, shape index: {}]  }
   0x1   :  { %13 = vsyncpa [#allocation7], 0 }
   0x2   :  { %14 = vsyncpa [#allocation10], 0 }
   0x3   :  { %15 = vsyncpa [#allocation5], 0  ;;  %s705_s24 = smov [#allocation6]  }
   0x4   :  { %s31_s25 = sshll.u32 %s705_s24, 4  ;;  %s32_s25 = int_to_ptr.vmem [resolvable:$true] %s31_s25 }
   0x5   :  { %s605_s26 = scalar_lea.vmem %s32_s25, 1024  ;;  %p610_p1 = scmp.lt.s32.totalorder %s32_s25, %s32_s25 }
   0x6   :  { %p606_p0 = scmp.ne.s32.totalorder %s32_s25, %s605_s26  ;;  %p611_p2 = scmp.lt.s32.totalorder %s605_s26, %s605_s26 }
   0x8   :  { %p612_p3 = por %p611_p2, %p610_p1 }
   0xa   :  { %p613_p4 = pnand %p612_p3, %p606_p0 }
   0xc   :  { %616 = shalt.err (!%p613_p4)
}
   0xd   :  { %s706_s27 = smov 64   ;;  %s707_s28 = smov 4  }
   0xe   :  { %37 = dma.hbm_to_vmem [thread:$0]  %s818_s1, 1024, %s32_s25, [#allocation7], %s706_s27, %s706_s27, %s707_s28  }
   0xf   :  { %s708_s8 = smov [#allocation3]   ;;  %s709_s10 = smov [#allocation8]  }
  0x10   :  { %s22_s9 = sshll.u32 %s708_s8, 4  ;;  %s45_s11 = sshll.u32 %s709_s10, 4  ;;  %s23_s9 = int_to_ptr.vmem [resolvable:$true] %s22_s9  ;;  %s46_s11 = int_to_ptr.vmem [resolvable:$true] %s45_s11 }
  0x11   :  { %s625_s12 = scalar_lea.vmem %s23_s9, 64  ;;  %p630_p6 = scmp.lt.s32.totalorder %s23_s9, %s23_s9 }
  0x12   :  { %p626_p5 = scmp.ne.s32.totalorder %s23_s9, %s625_s12  ;;  %p631_p7 = scmp.lt.s32.totalorder %s625_s12, %s625_s12 }
  0x14   :  { %p632_p8 = por %p631_p7, %p630_p6 }
  0x16   :  { %p633_p9 = pnand %p632_p8, %p626_p5 }
  0x18   :  { %636 = shalt.err (!%p633_p9)
}
  0x19   :  { %25 = dma.hbm_to_vmem [thread:$0]  %s817_s0, 64, %s23_s9, [#allocation4]  }
  0x1a   :  { %s645_s15 = scalar_lea.vmem %s46_s11, 1024  ;;  %p650_p11 = scmp.lt.s32.totalorder %s46_s11, %s46_s11 }
  0x1b   :  { %p646_p10 = scmp.ne.s32.totalorder %s46_s11, %s645_s15  ;;  %p651_p12 = scmp.lt.s32.totalorder %s645_s15, %s645_s15 }
  0x1d   :  { %p652_p13 = por %p651_p12, %p650_p11 }
  0x1f   :  { %p653_p0 = pnand %p652_p13, %p646_p10 }
  0x21   :  { %656 = shalt.err (!%p653_p0)
}
  0x22   :  { %51 = dma.hbm_to_vmem [thread:$0]  %s820_s3, 1024, %s46_s11, [#allocation7], %s706_s27, %s706_s27, %s707_s28  }
  0x23   :  { %s710_s17 = smov [#allocation9]  }
  0x24   :  { %s59_s18 = sshll.u32 %s710_s17, 4  ;;  %s60_s18 = int_to_ptr.vmem [resolvable:$true] %s59_s18 }
  0x25   :  { %s665_s19 = scalar_lea.vmem %s60_s18, 1024  ;;  %p670_p2 = scmp.lt.s32.totalorder %s60_s18, %s60_s18 }
  0x26   :  { %p666_p1 = scmp.ne.s32.totalorder %s60_s18, %s665_s19  ;;  %p671_p3 = scmp.lt.s32.totalorder %s665_s19, %s665_s19 }
  0x28   :  { %p672_p4 = por %p671_p3, %p670_p2 }
  0x2a   :  { %p673_p5 = pnand %p672_p4, %p666_p1 }
  0x2c   :  { %676 = shalt.err (!%p673_p5)
}
  0x2d   :  { %65 = dma.hbm_to_vmem [thread:$0]  %s822_s5, 1024, %s60_s18, [#allocation10], %s706_s27, %s706_s27, %s707_s28  }
  0x2e   :  { %697 = dma.done.wait [#allocation4], 64  }
  0x2f   :  { %698 = vsyncadd [#allocation4], 4294967232 }
  0x30   :  { %699 = dma.done.wait [#allocation7], 2048  }
  0x31   :  { %700 = vsyncadd [#allocation7], 4294965248 }
  0x32   :  { %701 = dma.done.wait [#allocation10], 1024  }
  0x33   :  { %702 = vsyncadd [#allocation10], 4294966272  ;;  %v711_v0 = vmov 0.0   ;;  %vm712_vm0 = vmmov 0   ;;  %v573_v1 = vld [vmem:[#allocation6 + $0x38] sm:$0xff]   ;;  %v574_v2 = vld [vmem:[#allocation6 + $0x30] sm:$0xff]  }
  0x34   :  { %504 = vmatprep.subr.bf16.mxu0 %v711_v0  ;;  %520 = vmatprep.mubr.msk.bf16.mxu0 %vm712_vm0, %v711_v0  ;;  %v575_v3 = vld [vmem:[#allocation6 + $0x28] sm:$0xff]   ;;  %v581_v4 = vld [vmem:[#allocation8 + $0x38] sm:$0xff]   ;;  %v576_v5 = vld [vmem:[#allocation6 + $0x20] sm:$0xff]   ;;  %s713_s24 = smov [#allocation11]  }
  0x35   :  { %524 = vmatprep.subr.bf16.mxu1 %v711_v0  ;;  %540 = vmatprep.mubr.msk.bf16.mxu1 %vm712_vm0, %v711_v0  ;;  %v582_v6 = vld [vmem:[#allocation8 + $0x30] sm:$0xff]   ;;  %v577_v7 = vld [vmem:[#allocation6 + $0x18] sm:$0xff]   ;;  %v583_v8 = vld [vmem:[#allocation8 + $0x28] sm:$0xff]   ;;  %s439_s25 = sshll.u32 %s713_s24, 4  ;;  %s440_s25 = int_to_ptr.vmem [resolvable:$true] %s439_s25 }
  0x36   :  { %505 = vmatpush3.bf16.msra.mxu0 %v573_v1  ;;  %525 = vmatpush3.bf16.msra.mxu1 %v581_v4  ;;  %v578_v9 = vld [vmem:[#allocation6 + $0x10] sm:$0xff]   ;;  %v584_v10 = vld [vmem:[#allocation8 + $0x20] sm:$0xff]   ;;  %v579_v11 = vld [vmem:[#allocation6 + $0x8] sm:$0xff]   ;;  %p682_p7 = scmp.lt.s32.totalorder %s440_s25, %s440_s25 }
  0x37   :  { %506 = vmatprep.subr.bf16.mxu0 %v711_v0  ;;  %526 = vmatprep.subr.bf16.mxu1 %v711_v0  ;;  %v585_v12 = vld [vmem:[#allocation8 + $0x18] sm:$0xff]   ;;  %v580_v13 = vld [vmem:[#allocation6] sm:$0xff]   ;;  %v586_v14 = vld [vmem:[#allocation8 + $0x10] sm:$0xff]  }
  0x38   :  { %v87_v15 = vld [vmem:[#allocation3] sm:$0xf]  ;;  %v587_v16 = vld [vmem:[#allocation8 + $0x8] sm:$0xff]   ;;  %v588_v17 = vld [vmem:[#allocation8] sm:$0xff]  }
  0x39   :  { %v589_v18 = vld [vmem:[#allocation9 + $0x38] sm:$0xff]   ;;  %v590_v19 = vld [vmem:[#allocation9 + $0x30] sm:$0xff]   ;;  %v591_v20 = vld [vmem:[#allocation9 + $0x28] sm:$0xff]  }
  0x3a   :  { %507 = vmatpush3.bf16.msra.mxu0 %v574_v2  ;;  %527 = vmatpush3.bf16.msra.mxu1 %v582_v6  ;;  %v592_v21 = vld [vmem:[#allocation9 + $0x20] sm:$0xff]   ;;  %v593_v22 = vld [vmem:[#allocation9 + $0x18] sm:$0xff]   ;;  %v594_v23 = vld [vmem:[#allocation9 + $0x10] sm:$0xff]  }
  0x3b   :  { %508 = vmatprep.subr.bf16.mxu0 %v711_v0  ;;  %528 = vmatprep.subr.bf16.mxu1 %v711_v0  ;;  %v458_v24 = vld [vmem:[%s819_s2] ss:$0 sm:$0xff]  ;;  %v595_v32 = vld [vmem:[#allocation9 + $0x8] sm:$0xff]   ;;  %v596_v33 = vld [vmem:[#allocation9] sm:$0xff]  }
  0x3c   :  { %v459_v34 = vld [vmem:[%s821_s4] ss:$0 sm:$0xff]  ;;  %s677_s4 = scalar_lea.vmem %s440_s25, 128 }
  0x3d   :  { %v468_v42 = vld [vmem:[%s823_s6] ss:$0 sm:$0xff]  ;;  %p678_p6 = scmp.ne.s32.totalorder %s440_s25, %s677_s4  ;;  %p683_p8 = scmp.lt.s32.totalorder %s677_s4, %s677_s4 }
  0x3e   :  { %509 = vmatpush3.bf16.msra.mxu0 %v575_v3  ;;  %529 = vmatpush3.bf16.msra.mxu1 %v583_v8 }
  0x3f   :  { %510 = vmatprep.subr.bf16.mxu0 %v711_v0  ;;  %530 = vmatprep.subr.bf16.mxu1 %v711_v0  ;;  %p684_p9 = por %p683_p8, %p682_p7 }
  0x41   :  { %p685_p10 = pnand %p684_p9, %p678_p6 }
  0x42   :  { %511 = vmatpush3.bf16.msra.mxu0 %v576_v5  ;;  %531 = vmatpush3.bf16.msra.mxu1 %v584_v10 }
  0x43   :  { %512 = vmatprep.subr.bf16.mxu0 %v711_v0  ;;  %532 = vmatprep.subr.bf16.mxu1 %v711_v0 }
  0x46   :  { %513 = vmatpush3.bf16.msra.mxu0 %v577_v7  ;;  %533 = vmatpush3.bf16.msra.mxu1 %v585_v12 }
  0x47   :  { %514 = vmatprep.subr.bf16.mxu0 %v711_v0  ;;  %534 = vmatprep.subr.bf16.mxu1 %v711_v0 }
  0x4a   :  { %515 = vmatpush3.bf16.msra.mxu0 %v578_v9  ;;  %535 = vmatpush3.bf16.msra.mxu1 %v586_v14 }
  0x4b   :  { %516 = vmatprep.subr.bf16.mxu0 %v711_v0  ;;  %536 = vmatprep.subr.bf16.mxu1 %v711_v0 }
  0x4e   :  { %517 = vmatpush3.bf16.msra.mxu0 %v579_v11  ;;  %537 = vmatpush3.bf16.msra.mxu1 %v587_v16 }
  0x4f   :  { %518 = vmatprep.subr.bf16.mxu0 %v711_v0  ;;  %538 = vmatprep.subr.bf16.mxu1 %v711_v0 }
  0x52   :  { %519 = vmatpush3.bf16.msra.mxu0 %v580_v13  ;;  %539 = vmatpush3.bf16.msra.mxu1 %v588_v17 }
  0x53   :  { %544 = vmatprep.subr.bf16.mxu0 %v711_v0 }
  0x55   :  { %521 = vmatmul.mubr.bf16.vlgmr.msra.gmra.mxu0 %v87_v15 }
  0x56   :  { %560 = vmatprep.mubr.msk.bf16.mxu0 %vm712_vm0, %v711_v0  ;;  %545 = vmatpush3.bf16.msra.mxu0 %v589_v18 }
  0x57   :  { %546 = vmatprep.subr.bf16.mxu0 %v711_v0 }
  0x5a   :  { %547 = vmatpush3.bf16.msra.mxu0 %v590_v19 }
  0x5b   :  { %548 = vmatprep.subr.bf16.mxu0 %v711_v0 }
  0x5e   :  { %549 = vmatpush3.bf16.msra.mxu0 %v591_v20 }
  0x5f   :  { %550 = vmatprep.subr.bf16.mxu0 %v711_v0 }
  0x62   :  { %551 = vmatpush3.bf16.msra.mxu0 %v592_v21 }
  0x63   :  { %552 = vmatprep.subr.bf16.mxu0 %v711_v0 }
  0x66   :  { %553 = vmatpush3.bf16.msra.mxu0 %v593_v22 }
  0x67   :  { %554 = vmatprep.subr.bf16.mxu0 %v711_v0 }
  0x6a   :  { %555 = vmatpush3.bf16.msra.mxu0 %v594_v23 }
  0x6b   :  { %556 = vmatprep.subr.bf16.mxu0 %v711_v0 }
  0x6e   :  { %557 = vmatpush3.bf16.msra.mxu0 %v595_v32 }
  0x6f   :  { %558 = vmatprep.subr.bf16.mxu0 %v711_v0 }
  0x72   :  { %559 = vmatpush3.bf16.msra.mxu0 %v596_v33 }
 0x115   :  { %v186_v25 = vpop.f32.mrf.mxu0 }
 0x116   :  { %v205_v26 = vadd.f32 %v458_v24, %v186_v25 }
 0x117   :  { %v522_v27 = vpop.f32.mrf.mxu0 }
 0x118   :  { %v206_v28 = vmax.f32 %v205_v26, 0.0 }
 0x119   :  { %v189_v29 = vpop.f32.mrf.mxu0 }
 0x11a   :  { %v207_v30 = vpack.c.bf16 %v206_v28, %v206_v28 }
 0x11b   :  { %v523_v31 = vpop.f32.mrf.mxu0 }
 0x11c   :  { %541 = vmatmul.mubr.bf16.vlgmr.msra.gmra.mxu1 %v207_v30 }
 0x1dc   :  { %v313_v35 = vpop.f32.mrf.mxu1 }
 0x1dd   :  { %v314_v36 = vadd.f32 %v459_v34, %v313_v35 }
 0x1de   :  { %v542_v37 = vpop.f32.mrf.mxu1 }
 0x1df   :  { %v319_v38 = vmax.f32 %v314_v36, 0.0 }
 0x1e0   :  { %v316_v39 = vpop.f32.mrf.mxu1 }
 0x1e1   :  { %v320_v40 = vpack.c.bf16 %v319_v38, %v319_v38 }
 0x1e2   :  { %v543_v41 = vpop.f32.mrf.mxu1 }
 0x1e3   :  { %561 = vmatmul.mubr.bf16.vlgmr.msra.gmra.mxu0 %v320_v40 }
 0x2a3   :  { %v426_v43 = vpop.f32.mrf.mxu0 }
 0x2a4   :  { %v427_v44 = vadd.f32 %v468_v42, %v426_v43 }
 0x2a5   :  { %v562_v45 = vpop.f32.mrf.mxu0 }
 0x2a6   :  { %432 = vst [vmem:[#allocation11] sm:$0xff] %v427_v44 }
 0x2a7   :  { %v429_v46 = vpop.f32.mrf.mxu0 }
 0x2a8   :  { %688 = shalt.err (!%p685_p10)
}
 0x2a9   :  { %442 = dma.vmem_to_hbm [thread:$0]  %s440_s25, 128, %s824_s7, [#allocation5]   ;;  %v563_v47 = vpop.f32.mrf.mxu0 }
 0x2aa   :  { %703 = dma.done.wait [#allocation5], 128  }
 0x2ab   :  { %704 = vsyncadd [#allocation5], 4294967168 }
 0x2ac   :  { %446 = vsyncpa [#allocation4], 1 }
 0x2ad   :  { %447 = vsyncpa [#allocation7], 1 }
 0x2ae   :  { %448 = vsyncpa [#allocation10], 1 }
 0x2af   :  { %449 = vsyncpa [#allocation5], 1 }

</bundles_post_ra>
